<compile_context>
chip_gen: v7x
topology: tpu7x:2x2x1
jax: 0.10.0
libtpu: 0.0.40
codegen_flags: <defaults>
</compile_context>

<pallas_src>
import numpy as np
import jax
import jax.numpy as jnp
from jax.experimental import pallas as pl
from jax.experimental.pallas import tpu as pltpu


# ----------------------------------------------------------------------------
# Parameter / operator precompute (plain numpy; analogous to nn.Module.__init__)
# ----------------------------------------------------------------------------
def _clenshaw_curtis_weights(n):
    """Quadrature weights for x = cos(theta_j), theta_j = j*pi/(n-1)."""
    N = n - 1
    theta = np.pi * np.arange(n) / N
    ks = np.arange(1, N // 2 + 1)
    b = np.where(2 * ks == N, 1.0, 2.0)
    w = np.zeros(n, dtype=np.float64)
    for j in range(n):
        s = np.sum(b * np.cos(2.0 * ks * theta[j]) / (4.0 * ks**2 - 1.0)) if len(ks) else 0.0
        c = 1.0 if (j == 0 or j == N) else 2.0
        w[j] = (c / N) * (1.0 - s)
    return w


def _legendre_norm(mmax, lmax, theta):
    """P[m, l, k] = orthonormal associated Legendre P_l^m(cos theta_k),
    Condon-Shortley phase included; zero for l < m."""
    assert mmax <= lmax
    x = np.cos(theta)
    s = np.sin(theta)
    nk = len(theta)
    P = np.zeros((mmax, lmax, nk), dtype=np.float64)
    P[0, 0, :] = np.sqrt(1.0 / (4.0 * np.pi))
    for m in range(1, mmax):
        P[m, m, :] = -np.sqrt((2.0 * m + 1.0) / (2.0 * m)) * s * P[m - 1, m - 1, :]
    for m in range(mmax):
        if m + 1 < lmax:
            P[m, m + 1, :] = np.sqrt(2.0 * m + 3.0) * x * P[m, m, :]
    for m in range(mmax):
        for l in range(m + 2, lmax):
            a = np.sqrt((4.0 * l * l - 1.0) / (l * l - m * m))
            b = np.sqrt(((2.0 * l + 1.0) * (l - 1.0 + m) * (l - 1.0 - m)) /
                        ((2.0 * l - 3.0) * (l * l - m * m)))
            P[m, l, :] = a * x * P[m, l - 1, :] - b * P[m, l - 2, :]
    return P


def build_vmf_operators(kappa, nlat, nlon, lmax=None, mmax=None,
                        input_ratio=1.0, output_ratio=1.0,
                        m_tile=None, op_dtype=jnp.bfloat16):
    in_nlat = int(round(nlat * input_ratio))
    in_nlon = int(round(nlon * input_ratio))
    out_nlat = int(round(nlat * output_ratio))
    out_nlon = int(round(nlon * output_ratio))
    if lmax is None:
        lmax = in_nlat
    if mmax is None:
        mmax = lmax
    assert mmax <= lmax
    assert mmax <= in_nlon // 2 + 1

    # forward longitudinal DFT: 2*pi * rfft(norm="forward"), truncated to mmax
    n = np.arange(in_nlon)
    ms = np.arange(mmax)
    ang = 2.0 * np.pi * np.outer(ms, n) / in_nlon
    F_re = (2.0 * np.pi / in_nlon) * np.cos(ang)
    F_im = -(2.0 * np.pi / in_nlon) * np.sin(ang)

    # equiangular latitudes (incl. poles) + Clenshaw-Curtis quadrature
    theta_in = np.pi * np.arange(in_nlat) / (in_nlat - 1)
    w = _clenshaw_curtis_weights(in_nlat)
    pct_in = _legendre_norm(mmax, lmax, theta_in)             # (mmax, lmax, in_nlat)
    W = pct_in * w[None, None, :]

    theta_out = np.pi * np.arange(out_nlat) / (out_nlat - 1)
    pct_out = _legendre_norm(mmax, lmax, theta_out)           # (mmax, lmax, out_nlat)

    # inverse longitudinal DFT: irfft(n=out_nlon, norm="forward")
    n2 = np.arange(out_nlon)
    ang2 = 2.0 * np.pi * np.outer(ms, n2) / out_nlon
    cm = np.where(ms == 0, 1.0, np.where(2 * ms == out_nlon, 1.0, 2.0))
    cm = np.where(ms > out_nlon // 2, 0.0, cm)                # irfft truncation
    G_re = cm[:, None] * np.cos(ang2)
    G_im = -cm[:, None] * np.sin(ang2)

    # VMF kernel exp(kappa*cos(phi)), Frobenius-normalized.  The module keeps
    # only the m=0 column of its SHT and broadcasts it over all m (isotropic
    # convolution -> real multiplier c_l; the m=0 imaginary part is exactly 0).
    phi = np.linspace(0.0, np.pi, in_nlat)
    ker = np.exp(kappa * np.cos(phi))[:, None] * np.ones((1, in_nlon))
    ker = ker / np.linalg.norm(ker)
    c_l = np.einsum('kn,n,lk->l', ker, F_re[0], W[0])         # (lmax,)
    if not np.any(np.abs(c_l) > 0):
        raise ValueError('kappa too big')
    # learn_weights / learn_bias default to False -> identity on coefficients.

    # combined per-m analysis / synthesis operators (float64)
    P_in = in_nlat * in_nlon
    P_out = out_nlat * out_nlon
    A_re = np.einsum('mn,mlk->mknl', F_re, W).reshape(mmax, P_in, lmax)
    A_im = np.einsum('mn,mlk->mknl', F_im, W).reshape(mmax, P_in, lmax)
    B_re = np.einsum('mlk,mn->mlkn', pct_out, G_re).reshape(mmax, lmax, P_out)
    B_im = np.einsum('mlk,mn->mlkn', pct_out, G_im).reshape(mmax, lmax, P_out)

    # perf: fold the VMF coefficient multiply into the synthesis operators.
    Bc_re = c_l[None, :, None] * B_re
    Bc_im = c_l[None, :, None] * B_im

    # perf: drop modes the output irfft truncates (their synthesis op is zero).
    mmax_eff = min(mmax, out_nlon // 2 + 1)

    # perf: concatenate re/im and pack m_tile wavenumbers per grid step so the
    # intermediate matmul dimension is lane-dense (>= 128, target ~256).
    two_l = 2 * lmax
    if m_tile is None:
        m_tile = int(max(1, min(mmax_eff, -(-256 // two_l))))
    ng = -(-mmax_eff // m_tile)
    m_pad = ng * m_tile
    A_cat = np.concatenate([A_re, A_im], axis=-1)             # (mmax, P_in, 2l)
    B_cat = np.concatenate([Bc_re, Bc_im], axis=1)            # (mmax, 2l, P_out)
    A_pack = np.zeros((m_pad, P_in, two_l))
    B_pack = np.zeros((m_pad, two_l, P_out))
    A_pack[:mmax_eff] = A_cat[:mmax_eff]
    B_pack[:mmax_eff] = B_cat[:mmax_eff]
    A_pack = np.transpose(A_pack.reshape(ng, m_tile, P_in, two_l),
                          (0, 2, 1, 3)).reshape(ng, P_in, m_tile * two_l)
    B_pack = B_pack.reshape(ng, m_tile * two_l, P_out)

    # exact float64 algebra self-check: the folded + packed operators reproduce
    # the original SHT -> c_l multiply -> inverse SHT computation.
    rng = np.random.RandomState(0)
    xt = rng.standard_normal((4, P_in))
    xr = np.einsum('bp,mpl->bml', xt, A_re)
    xi = np.einsum('bp,mpl->bml', xt, A_im)
    ref_u = (np.einsum('bml,mlq->bq', xr * c_l[None, None, :], B_re) +
             np.einsum('bml,mlq->bq', xi * c_l[None, None, :], B_im))
    ref_p = np.zeros_like(ref_u)
    for g in range(ng):
        ref_p += (xt @ A_pack[g]) @ B_pack[g]
    np.testing.assert_allclose(ref_p, ref_u, rtol=1e-9,
                               atol=1e-9 * np.abs(ref_u).max())

    return dict(
        A=jnp.asarray(A_pack, op_dtype),       # (ng, P_in, m_tile*2*lmax)
        B=jnp.asarray(B_pack, op_dtype),       # (ng, m_tile*2*lmax, P_out)
        out_nlat=out_nlat, out_nlon=out_nlon,
    )


# ----------------------------------------------------------------------------
# Pallas kernel: two lane-dense bf16 MXU matmuls per (row-tile, m-group) step.
# ----------------------------------------------------------------------------
def _vmf_conv_kernel(x_ref, a_ref, b_ref, o_ref):
    # grid = (row_tiles, m_groups); the m-group axis (last) is the reduction.
    # o_ref is the same block for every g -> stays resident in VMEM (f32 acc).
    @pl.when(pl.program_id(1) == 0)
    def _():
        o_ref[...] = jnp.zeros_like(o_ref)

    # analysis: SHT coefficients (re & im, several m's) for this group.
    xc = jnp.dot(x_ref[...], a_ref[...], preferred_element_type=jnp.float32)
    # synthesis (VMF coefficients pre-folded into b_ref); accumulate the m-sum.
    o_ref[...] += jnp.dot(xc.astype(b_ref.dtype), b_ref[...],
                          preferred_element_type=jnp.float32)


def vmf_convolution(x, ops, row_tile=128):
    Bsz, C, nlat, nlon = x.shape
    N = Bsz * C
    A, Bop = ops["A"], ops["B"]
    ng, P_in, Kb = A.shape
    P_out = Bop.shape[2]
    assert P_in == nlat * nlon

    # Shrink the row tile for tiny batches (still a multiple of 8 sublanes) so
    # we don't pad 8 rows up to 128; cap at `row_tile` for large batches.
    row_tile = int(min(row_tile, max(8, -(-N // 8) * 8)))

    # bf16 inputs (f32 accumulation in-kernel); pad rows to full row tiles.
    X = x.reshape(N, P_in).astype(A.dtype)
    n_tiles = -(-N // row_tile)
    N_pad = n_tiles * row_tile
    if N_pad != N:
        X = jnp.pad(X, ((0, N_pad - N), (0, 0)))

    out = pl.pallas_call(
        _vmf_conv_kernel,
        out_shape=jax.ShapeDtypeStruct((N_pad, P_out), jnp.float32),
        grid_spec=pltpu.PrefetchScalarGridSpec(
            num_scalar_prefetch=0,
            grid=(n_tiles, ng),                                   # reduction last
            in_specs=[
                pl.BlockSpec((row_tile, P_in), lambda i, g: (i, 0)),     # x tile
                pl.BlockSpec((None, P_in, Kb), lambda i, g: (g, 0, 0)),  # A_pack[g]
                pl.BlockSpec((None, Kb, P_out), lambda i, g: (g, 0, 0)), # B_pack[g]
            ],
            out_specs=pl.BlockSpec((row_tile, P_out), lambda i, g: (i, 0)),  # accum
        ),
        compiler_params=pltpu.CompilerParams(
            # "parallel" row-tile axis -> megacore splits the batch rows;
            # "arbitrary" m-group axis -> sequential reduction into o_ref.
            dimension_semantics=("parallel", "arbitrary")),
    )(X, A, Bop)
    out = out[:N].astype(x.dtype)
    return out.reshape(Bsz, C, ops["out_nlat"], ops["out_nlon"])


if __name__ == "__main__":
    B, C, nlat, nlon = 2, 4, 16, 32
    kappa = 5.0
    ops = build_vmf_operators(kappa, nlat, nlon, lmax=16, mmax=16,
                              input_ratio=1.0, output_ratio=1.0)

    key = jax.random.PRNGKey(0)
    x = jax.random.normal(key, (B, C, nlat, nlon), dtype=jnp.float32)

    y = vmf_convolution(x, ops)
    y = jax.block_until_ready(y)
    assert y.shape == (B, C, ops["out_nlat"], ops["out_nlon"])

    # Reference: same bf16-quantized operators / input, float64 math.  (The
    # float64 algebra check inside build_vmf_operators already ties the packed
    # operators to the original SHT -> c_l -> inverse-SHT formulation.)
    A64 = np.asarray(ops["A"].astype(jnp.float32), np.float64)
    B64 = np.asarray(ops["B"].astype(jnp.float32), np.float64)
    Xq = np.asarray(
        jnp.asarray(x).reshape(B * C, nlat * nlon)
        .astype(ops["A"].dtype).astype(jnp.float32), np.float64)
    ref = np.zeros((B * C, B64.shape[2]))
    for g in range(A64.shape[0]):
        ref += (Xq @ A64[g]) @ B64[g]
    ref = ref.reshape(B, C, ops["out_nlat"], ops["out_nlon"])

    scale = float(np.abs(ref).max())
    np.testing.assert_allclose(np.asarray(y), ref, rtol=2e-2, atol=2e-2 * scale)
    print("KERNEL_OK")
</pallas_src>

<mosaic_0001>
module attributes {stable_mosaic.version = 11 : i64} {
  func.func @_vmf_conv_kernel(%arg0: i32, %arg1: i32, %arg2: memref<8x512xbf16, #tpu.memory_space<vmem>>, %arg3: memref<1x512x256xbf16, #tpu.memory_space<vmem>>, %arg4: memref<1x256x512xbf16, #tpu.memory_space<vmem>>, %arg5: memref<8x512xf32, #tpu.memory_space<vmem>>) attributes {dimension_semantics = [#tpu.dimension_semantics<parallel>, #tpu.dimension_semantics<arbitrary>], iteration_bounds = array<i64: 1, 2>, scalar_prefetch = 0 : i64, scratch_operands = 0 : i64, tpu.core_type = #tpu.core_type<tc>, window_params = [{transform_indices = @transform_0, window_bounds = array<i64: 8, 512>}, {transform_indices = @transform_1, window_bounds = array<i64: 1, 512, 256>}, {transform_indices = @transform_2, window_bounds = array<i64: 1, 256, 512>}, {transform_indices = @transform_3, window_bounds = array<i64: 8, 512>}]} {
    %c0_i32 = arith.constant 0 : i32
    %0 = arith.cmpi eq, %arg1, %c0_i32 : i32
    %1 = arith.extui %0 : i1 to i32
    %c0_i32_0 = arith.constant 0 : i32
    %2 = arith.cmpi ne, %1, %c0_i32_0 : i32
    scf.if %2 {
      %cst_13 = arith.constant 0.000000e+00 : f32
      %14 = vector.broadcast %cst_13 : f32 to vector<8x512xf32>
      %c0_14 = arith.constant 0 : index
      %c0_15 = arith.constant 0 : index
      %15 = vector.load %arg5[%c0_14, %c0_15] : memref<8x512xf32, #tpu.memory_space<vmem>>, vector<8x512xf32>
      tpu.vector_store %arg5[%c0_14, %c0_15], %14 {strides = array<i32>} : memref<8x512xf32, #tpu.memory_space<vmem>>, vector<8x512xf32>,
    } else {
    }
    %c0 = arith.constant 0 : index
    %c0_1 = arith.constant 0 : index
    %3 = vector.load %arg2[%c0, %c0_1] : memref<8x512xbf16, #tpu.memory_space<vmem>>, vector<8x512xbf16>
    %c0_2 = arith.constant 0 : index
    %c0_3 = arith.constant 0 : index
    %c0_4 = arith.constant 0 : index
    %4 = vector.load %arg3[%c0_2, %c0_3, %c0_4] : memref<1x512x256xbf16, #tpu.memory_space<vmem>>, vector<1x512x256xbf16>
    %5 = vector.shape_cast %4 : vector<1x512x256xbf16> to vector<512x256xbf16>
    %cst = arith.constant dense<0.000000e+00> : vector<8x256xf32>
    %6 = tpu.matmul %3, %5, %cst {dimension_numbers = #tpu.dot_dimension_numbers<[1], [0], [0], [1], [0, 0, 1, 1], [], []>} : vector<8x512xbf16>, vector<512x256xbf16>, vector<8x256xf32> -> vector<8x256xf32>
    %c0_5 = arith.constant 0 : index
    %c0_6 = arith.constant 0 : index
    %7 = vector.load %arg5[%c0_5, %c0_6] : memref<8x512xf32, #tpu.memory_space<vmem>>, vector<8x512xf32>
    %8 = arith.truncf %6 : vector<8x256xf32> to vector<8x256xbf16>
    %c0_7 = arith.constant 0 : index
    %c0_8 = arith.constant 0 : index
    %c0_9 = arith.constant 0 : index
    %9 = vector.load %arg4[%c0_7, %c0_8, %c0_9] : memref<1x256x512xbf16, #tpu.memory_space<vmem>>, vector<1x256x512xbf16>
    %10 = vector.shape_cast %9 : vector<1x256x512xbf16> to vector<256x512xbf16>
    %cst_10 = arith.constant dense<0.000000e+00> : vector<8x512xf32>
    %11 = tpu.matmul %8, %10, %cst_10 {dimension_numbers = #tpu.dot_dimension_numbers<[1], [0], [0], [1], [0, 0, 1, 1], [], []>} : vector<8x256xbf16>, vector<256x512xbf16>, vector<8x512xf32> -> vector<8x512xf32>
    %12 = arith.addf %7, %11 : vector<8x512xf32>
    %c0_11 = arith.constant 0 : index
    %c0_12 = arith.constant 0 : index
    %13 = vector.load %arg5[%c0_11, %c0_12] : memref<8x512xf32, #tpu.memory_space<vmem>>, vector<8x512xf32>
    tpu.vector_store %arg5[%c0_11, %c0_12], %12 {strides = array<i32>} : memref<8x512xf32, #tpu.memory_space<vmem>>, vector<8x512xf32>,
    return
  }
  func.func @transform_0(%arg0: i32, %arg1: i32) -> (i32, i32) {
    %c0_i32 = arith.constant 0 : i32
    %c0_i32_0 = arith.constant 0 : i32
    return %arg0, %c0_i32 : i32, i32
  }
  func.func @transform_1(%arg0: i32, %arg1: i32) -> (i32, i32, i32) {
    %c0_i32 = arith.constant 0 : i32
    %c0_i32_0 = arith.constant 0 : i32
    %c0_i32_1 = arith.constant 0 : i32
    return %arg1, %c0_i32, %c0_i32_0 : i32, i32, i32
  }
  func.func @transform_2(%arg0: i32, %arg1: i32) -> (i32, i32, i32) {
    %c0_i32 = arith.constant 0 : i32
    %c0_i32_0 = arith.constant 0 : i32
    %c0_i32_1 = arith.constant 0 : i32
    return %arg1, %c0_i32, %c0_i32_0 : i32, i32, i32
  }
  func.func @transform_3(%arg0: i32, %arg1: i32) -> (i32, i32) {
    %c0_i32 = arith.constant 0 : i32
    %c0_i32_0 = arith.constant 0 : i32
    return %arg0, %c0_i32 : i32, i32
  }
}

</mosaic_0001>

<bundles_post_ra>
// kernel: tpu_custom_call.1
= control target key start
LH: loop header
LB: loop body
LE: loop exit
PB: predicated region body
PF: predicated region fallthrough
CT: control target
= control target key end

     0   :  { %8 = vsyncpa [#allocation3], 0  ;;  %s2341_s0 = inlined_call_operand.hbm [shape: bf16[8,512], index: 0, kind: input, shape index: {}]   ;;  %s2342_s1 = inlined_call_operand.hbm [shape: bf16[2,512,256], index: 1, kind: input, shape index: {}]   ;;  %s2343_s2 = inlined_call_operand.hbm [shape: bf16[2,256,512], index: 2, kind: input, shape index: {}]   ;;  %s2344_s3 = inlined_call_operand.hbm [shape: f32[8,512], index: 3, kind: output, shape index: {}]  }
   0x1   :  { %9 = vsyncpa [#allocation6], 0 }
   0x2   :  { %11 = vsyncpa [#allocation6 + $0x1], 0 }
   0x3   :  { %12 = vsyncpa [#allocation4], 0  ;;  %s1966_s12 = smov 0   ;;  %s1968_s13 = smov 0  }
   0x4   :  { %s1970_s14 = smov 0   ;;  %s1972_s15 = smov 0  }
   0x5   :  { %s1974_s16 = smov 0   ;;  %s1976_s17 = smov 0  }
   0x6 LB: > { %s27_s18 = sadd.s32 1, %s1931_s16  ;;  %s63_s19 = sadd.s32 1, %s1923_s14  ;;  %s1935_s17 = sphi %s1976_s17, %s18_s17   ;;  %s1931_s16 = sphi %s1974_s16, %s2360_s16   ;;  %s1927_s15 = sphi %s1972_s15, %s2359_s15   ;;  %s1923_s14 = sphi %s1970_s14, %s2358_s14   ;;  %s1919_s13 = sphi %s1968_s13, %s2357_s13   ;;  %s1915_s12 = sphi %s1966_s12, %s2356_s12  }
   0x7   : > { %p28_p0 = scmp.ge.s32.totalorder %s27_s18, 2  ;;  %p70_p1 = scmp.ne.s32.totalorder %s1923_s14, %s1919_s13 }
   0x8   : > { %p71_p2 = scmp.eq.s32.totalorder %s1935_s17, 0  ;;  %p1508_p4 = scmp.lt.s32.totalorder %s1935_s17, 2 }
   0x9   : > { %s2362_s18 = smov (%p28_p0, %s27_s18), 0  ;;  %s166_s21 = sand.u32 1, %s1935_s17  }
   0xa   : > { %p72_p3 = por %p71_p2, %p70_p1  ;;  %s60_s20 = ssub.s32 %s1931_s16, %s2362_s18 }
   0xb   : > { %p61_p5 = scmp.eq.s32.totalorder %s60_s20, 0  ;;  %s168_s22 = sand.u32 1, %s1923_s14  }
   0xc   : > { %s1478_s23 = sshll.u32 %s1931_s16, 13  ;;  %s2012_s25 = sshll.u32 %s168_s22, 9 }
   0xd   : > { %s2010_s24 = scalar_select %p61_p5, %s1923_s14, %s63_s19  }
   0xe   : > { %s2019_s28 = scalar_lea.hbm %s2342_s1, %s1478_s23  ;;  %p2021_p6 = pnand %p1508_p4, %p72_p3 }
   0xf   : > { %s170_s30 = scalar_lea.vmem [#allocation5], %s2012_s25  ;;  %s2028_s5 = scalar_lea.sflag [#allocation6], %s166_s21 }
  0x10   : > { %s177_s4 = sshll.u32 %s170_s30, 4  ;;  %s1763_s6 = scalar_lea.hbm %s2019_s28, 8192  ;;  %s2026_s4 = int_to_ptr.vmem [resolvable:$true] %s177_s4 }
  0x11   : > { %p1764_p7 = scmp.ne.s32.totalorder %s2019_s28, %s1763_s6  ;;  %p1765_p8 = pneg %p2021_p6 }
  0x12   : > { %s1768_s9 = scalar_lea.hbm %s2342_s1, 16384  ;;  %p1769_p11 = scmp.lt.u32.totalorder %s2019_s28, %s2342_s1 }
  0x13   : > { %p1766_p9 = pnand %p1765_p8, %p1764_p7  ;;  %p1770_p12 = scmp.lt.u32.totalorder %s1768_s9, %s1763_s6 }
  0x14   : > { %p1772_p0 = scmp.lt.u32.totalorder %s1763_s6, %s2019_s28 }
  0x15   : > { %p1767_p10 = pneg %p1766_p9  ;;  %p1771_p13 = por %p1770_p12, %p1769_p11 }
  0x17   : > { %p1773_p1 = por %p1772_p0, %p1771_p13 }
  0x19   : > { %p1774_p2 = pnand %p1773_p1, %p1767_p10 }
  0x1b   : > { %1777 = shalt.err (!%p1774_p2)
}
  0x1c   : > { %s1778_s19 = scalar_lea.vmem %s2026_s4, 8192  ;;  %s1937_s20 = smov [#allocation5]  }
  0x1d   : > { %p1779_p3 = scmp.ne.s32.totalorder %s2026_s4, %s1778_s19  ;;  %s1783_s21 = sshll.u32 %s1937_s20, 4  ;;  %s1784_s21 = int_to_ptr.vmem [resolvable:$false] %s1783_s21 }
  0x1e   : > { %s1785_s22 = scalar_lea.vmem %s1784_s21, 16384  ;;  %p1786_p7 = scmp.lt.s32.totalorder %s2026_s4, %s1784_s21 }
  0x1f   : > { %p1781_p4 = pnand %p1779_p3, %p1765_p8  ;;  %p1787_p9 = scmp.lt.s32.totalorder %s1785_s22, %s1778_s19 }
  0x21   : > { %p1782_p5 = pneg %p1781_p4  ;;  %p1788_p11 = por %p1787_p9, %p1786_p7 }
  0x23   : > { %p1789_p12 = pnand %p1788_p11, %p1782_p5 }
  0x25   : > { %1792 = shalt.err (!%p1789_p12)
}
  0x26   : > { %s1938_s26 = smov 128   ;;  %s1939_s27 = smov 8  }
  0x27   : > { %1503 = dma.hbm_to_vmem [thread:$0]  (!%p2021_p6), %s2019_s28, 8192, %s2026_s4, %s2028_s5, %s1938_s26, %s1938_s26, %s1939_s27  }
  0x28   : > { %s2061_s7 = scalar_lea.hbm %s2343_s2, %s1478_s23  ;;  %s191_s8 = scalar_lea.vmem [#allocation7], %s2012_s25 }
  0x29   : > { %s198_s9 = sshll.u32 %s191_s8, 4  ;;  %s2065_s10 = sadd.s32 4294967295, %s1935_s17   ;;  %s2082_s9 = int_to_ptr.vmem [resolvable:$true] %s198_s9 }
  0x2a   : > { %p76_p10 = scmp.ne.s32.totalorder %s1919_s13, %s1915_s12  ;;  %p2345_p13 = scmp.eq.s32.totalorder %s2065_s10, 0 }
  0x2b   : > { %p1328_p0 = scmp.ge.s32.totalorder %s1935_s17, 1  ;;  %p139_p1 = scmp.lt.s32.totalorder %s1935_s17, 3 }
  0x2c   : > { %p2074_p2 = por %p2345_p13, %p76_p10  ;;  %s1940_s25 = smov [#allocation2]  }
  0x2d   : > { %p2078_p3 = pnand %p1328_p0, %p139_p1  ;;  %s155_s4 = sshll.u32 %s1940_s25, 4  ;;  %s2086_s4 = int_to_ptr.vmem [resolvable:$true] %s155_s4 }
  0x2e   : > { %s2349_s28 = scalar_select %p2074_p2, 1, 0 }
  0x2f   : > { %s2350_s23 = scalar_select %p2078_p3, 1, 0 }
  0x30   : > { %p1496_p4 = pneg %p2078_p3  ;;  %s1793_s11 = scalar_lea.hbm %s2061_s7, 8192 }
  0x31   : > { %p1794_p7 = scmp.ne.s32.totalorder %s2061_s7, %s1793_s11  ;;  %s1798_s21 = scalar_lea.hbm %s2343_s2, 16384 }
  0x32   : > { %p2090_p5 = pnand %p1496_p4, %p2345_p13  ;;  %p1799_p12 = scmp.lt.u32.totalorder %s2061_s7, %s2343_s2 }
  0x33   : > { %p1796_p9 = pnand %p1794_p7, %p1765_p8  ;;  %p1800_p10 = scmp.lt.u32.totalorder %s1798_s21, %s1793_s11 }
  0x34   : > { %p1802_p1 = scmp.lt.u32.totalorder %s1793_s11, %s2061_s7 }
  0x35   : > { %p1797_p11 = pneg %p1796_p9  ;;  %p1801_p0 = por %p1800_p10, %p1799_p12 }
  0x37   : > { %p1803_p4 = por %p1802_p1, %p1801_p0 }
  0x39   : > { %p1804_p13 = pnand %p1803_p4, %p1797_p11 }
  0x3b   : > { %1807 = shalt.err (!%p1804_p13)
}
  0x3c   : > { %s1808_s27 = scalar_lea.vmem %s2082_s9, 8192  ;;  %s1941_s30 = smov [#allocation7]  }
  0x3d   : > { %p1809_p7 = scmp.ne.s32.totalorder %s2082_s9, %s1808_s27  ;;  %s1813_s6 = sshll.u32 %s1941_s30, 4  ;;  %s1814_s6 = int_to_ptr.vmem [resolvable:$false] %s1813_s6 }
  0x3e   : > { %s1815_s8 = scalar_lea.vmem %s1814_s6, 16384  ;;  %p1816_p3 = scmp.lt.s32.totalorder %s2082_s9, %s1814_s6 }
  0x3f   : > { %p1811_p9 = pnand %p1809_p7, %p1765_p8  ;;  %p1817_p12 = scmp.lt.s32.totalorder %s1815_s8, %s1808_s27 }
  0x41   : > { %p1812_p2 = pneg %p1811_p9  ;;  %p1818_p10 = por %p1817_p12, %p1816_p3 }
  0x43   : > { %p1819_p0 = pnand %p1818_p10, %p1812_p2 }
  0x45   : > { %1822 = shalt.err (!%p1819_p0)
}
  0x46   : > { %s1942_s25 = smov 256   ;;  %s1943_s11 = smov 16  }
  0x47   : > { %1506 = dma.hbm_to_vmem [thread:$0]  (!%p2021_p6), %s2061_s7, 8192, %s2082_s9, %s2028_s5, %s1942_s25, %s1942_s25, %s1943_s11  }
  0x48   : > { %s1823_s21 = scalar_lea.hbm %s2341_s0, 256  ;;  %p1825_p13 = pneg %p2090_p5 }
  0x49   : > { %p1824_p8 = scmp.ne.s32.totalorder %s2341_s0, %s1823_s21  ;;  %p1830_p11 = scmp.lt.u32.totalorder %s1823_s21, %s2341_s0 }
  0x4b   : > { %p1826_p2 = pnand %p1825_p13, %p1824_p8 }
  0x4d   : > { %p1827_p3 = pneg %p1826_p2 }
  0x4f   : > { %p1832_p1 = pnand %p1830_p11, %p1827_p3 }
  0x51   : > { %1835 = shalt.err (!%p1832_p1)
}
  0x52   : > { %s1836_s29 = scalar_lea.vmem %s2086_s4, 256  ;;  %p1844_p9 = scmp.lt.s32.totalorder %s2086_s4, %s2086_s4 }
  0x53   : > { %p1837_p6 = scmp.ne.s32.totalorder %s2086_s4, %s1836_s29  ;;  %p1845_p12 = scmp.lt.s32.totalorder %s1836_s29, %s1836_s29 }
  0x55   : > { %p1839_p4 = pnand %p1837_p6, %p1825_p13  ;;  %p1846_p10 = por %p1845_p12, %p1844_p9 }
  0x57   : > { %p1840_p7 = pneg %p1839_p4 }
  0x59   : > { %p1847_p0 = pnand %p1846_p10, %p1840_p7 }
  0x5b   : > { %1850 = shalt.err (!%p1847_p0)
}
  0x5c   : > { %1499 = dma.hbm_to_vmem [thread:$0]  (!%p2090_p5), %s2341_s0, 256, %s2086_s4, [#allocation3]  }
  0x5d   : > { %p2352_p8 = scmp.ne.s32.totalorder %s2350_s23, 0 }
  0x5e   : > { %p2353_p2 = scmp.eq.s32.totalorder (!%p2352_p8), %s2065_s10, 0 }
  0x5f   : > { %210 = sbr.rel (%p2352_p8) target bundleno = 756 (0x2f4), region = 32 }
  0x66   : > { %1902 = dma.done.wait (%p2353_p2), [#allocation3], 256   ;;  %p2354_p13 = pmov %p2353_p2 }
  0x67   : > { %s216_s9 = sand.u32 1, %s2065_s10   ;;  %s218_s6 = sand.u32 1, %s1919_s13  }
  0x68   : > { %1904 = vsyncadd (%p2354_p13), [#allocation3], 4294967040  ;;  %s1339_s12 = sshll.u32 %s218_s6, 9  ;;  %s217_s8 = scalar_lea.sflag [#allocation6], %s216_s9 }
  0x69   : > { %s2147_s25 = scalar_lea.vmem [#allocation5], %s1339_s12  ;;  %p2355_p3 = scmp.ne.s32.totalorder %s2349_s28, 0 }
  0x6b   : > { %1906 = dma.done.wait (%p2355_p3), %s217_s8, 16384  }
  0x6c   : > { %1908 = vsyncadd (%p2355_p3), %s217_s8, 4294950912  ;;  %s2153_s23 = scalar_lea.vmem [#allocation7], %s1339_s12  ;;  %p1341_p5 = scmp.ne.s32.totalorder %s1927_s15, 0 }
  0x6d   : > { %v1944_v0 = vmov (!%p1341_p5), 0.0  }
  0x6e   : > { %255 = sbr.rel (%p1341_p5) target bundleno = 117 (0x75), region = 48  ;;  %256 = vst [vmem:[#allocation8] sm:$0xff] (!%p1341_p5), %v1944_v0  ;;  %257 = vst [vmem:[#allocation8 + $0x8] sm:$0xff] (!%p1341_p5), %v1944_v0 }
  0x6f   : > { %258 = vst [vmem:[#allocation8 + $0x10] sm:$0xff] (!%p1341_p5), %v1944_v0  ;;  %259 = vst [vmem:[#allocation8 + $0x18] sm:$0xff] (!%p1341_p5), %v1944_v0 }
  0x75 PF: > { %v1567_v1 = vld [vmem:[%s2147_s25 + $0x4] ss:$8 sps:$4 sm:$0xff]   ;;  %v1569_v2 = vld [vmem:[%s2147_s25] ss:$8 sps:$4 sm:$0xff]   ;;  %v1570_v3 = vld [vmem:[%s2147_s25 + $0x14] ss:$8 sps:$4 sm:$0xff]  }
  0x76   : > { %660 = vmatprep.subr.bf16.mxu0 %v1567_v1  ;;  %v1572_v4 = vld [vmem:[%s2147_s25 + $0x10] ss:$8 sps:$4 sm:$0xff]   ;;  %v1573_v5 = vld [vmem:[%s2147_s25 + $0x24] ss:$8 sps:$4 sm:$0xff]   ;;  %v1575_v6 = vld [vmem:[%s2147_s25 + $0x20] ss:$8 sps:$4 sm:$0xff]  }
  0x77   : > { %661 = vmatpush1.bf16.msra.mxu0 %v1569_v2  ;;  %v1576_v7 = vld [vmem:[%s2147_s25 + $0x34] ss:$8 sps:$4 sm:$0xff]   ;;  %v1578_v8 = vld [vmem:[%s2147_s25 + $0x30] ss:$8 sps:$4 sm:$0xff]   ;;  %v1579_v9 = vld [vmem:[%s2147_s25 + $0x44] ss:$8 sps:$4 sm:$0xff]  }
  0x78   : > { %662 = vmatprep.subr.bf16.mxu0 %v1570_v3  ;;  %v1581_v10 = vld [vmem:[%s2147_s25 + $0x40] ss:$8 sps:$4 sm:$0xff]   ;;  %v1582_v11 = vld [vmem:[%s2147_s25 + $0x54] ss:$8 sps:$4 sm:$0xff]   ;;  %v1584_v12 = vld [vmem:[%s2147_s25 + $0x50] ss:$8 sps:$4 sm:$0xff]  }
  0x79   : > { %v1585_v13 = vld [vmem:[%s2147_s25 + $0x64] ss:$8 sps:$4 sm:$0xff]   ;;  %v2169_v14 = vld [vmem:[#allocation2] sm:$0xff]  ;;  %v1587_v16 = vld [vmem:[%s2147_s25 + $0x60] ss:$8 sps:$4 sm:$0xff]   ;;  %s1945_s15 = smov [#allocation8]  }
  0x7a   : > { %v1343_v15 = vcombine.high %v2169_v14, %v2169_v14  ;;  %v1588_v17 = vld [vmem:[%s2147_s25 + $0x74] ss:$8 sps:$4 sm:$0xff]   ;;  %v1590_v18 = vld [vmem:[%s2147_s25 + $0x70] ss:$8 sps:$4 sm:$0xff]   ;;  %v1591_v19 = vld [vmem:[%s2147_s25 + $0x84] ss:$8 sps:$4 sm:$0xff]   ;;  %v1342_v49 = vcombine.low %v2169_v14, %v2169_v14 }
  0x7b   : > { %663 = vmatpush1.bf16.msra.mxu0 %v1572_v4  ;;  %v1593_v20 = vld [vmem:[%s2147_s25 + $0x80] ss:$8 sps:$4 sm:$0xff]   ;;  %v1594_v21 = vld [vmem:[%s2147_s25 + $0x94] ss:$8 sps:$4 sm:$0xff]   ;;  %v1596_v22 = vld [vmem:[%s2147_s25 + $0x90] ss:$8 sps:$4 sm:$0xff]  }
  0x7c   : > { %664 = vmatprep.subr.bf16.mxu0 %v1573_v5  ;;  %692 = vmatprep.mubr.bf16.mxu0 %v1343_v15  ;;  %v1597_v23 = vld [vmem:[%s2147_s25 + $0xa4] ss:$8 sps:$4 sm:$0xff]   ;;  %v1599_v24 = vld [vmem:[%s2147_s25 + $0xa0] ss:$8 sps:$4 sm:$0xff]   ;;  %v1600_v25 = vld [vmem:[%s2147_s25 + $0xb4] ss:$8 sps:$4 sm:$0xff]  }
  0x7d   : > { %v1602_v26 = vld [vmem:[%s2147_s25 + $0xb0] ss:$8 sps:$4 sm:$0xff]   ;;  %v1603_v27 = vld [vmem:[%s2147_s25 + $0xc4] ss:$8 sps:$4 sm:$0xff]   ;;  %v1605_v31 = vld [vmem:[%s2147_s25 + $0xc0] ss:$8 sps:$4 sm:$0xff]  }
  0x7e   : > { %v1667_v28 = vld [vmem:[%s2153_s23 + $0x4] ss:$16 sps:$4 sm:$0xff]   ;;  %v1669_v29 = vld [vmem:[%s2153_s23] ss:$16 sps:$4 sm:$0xff]   ;;  %v2203_v46 = vld [vmem:[#allocation2 + $0x8] sm:$0xff]  ;;  %s1232_s28 = sshll.u32 %s1945_s15, 4  ;;  %s1233_s28 = int_to_ptr.vmem [resolvable:$true] %s1232_s28 }
  0x7f   : > { %665 = vmatpush1.bf16.msra.mxu0 %v1575_v6  ;;  %v1670_v30 = vld [vmem:[%s2153_s23 + $0x24] ss:$16 sps:$4 sm:$0xff]   ;;  %1132 = vmatprep.subr.bf16.mxu1 %v1667_v28  ;;  %v1672_v32 = vld [vmem:[%s2153_s23 + $0x20] ss:$16 sps:$4 sm:$0xff]   ;;  %v1345_v52 = vcombine.high %v2203_v46, %v2203_v46  ;;  %p1510_p11 = scmp.eq.s32.totalorder %s2065_s10, 1  ;;  %s1851_s4 = scalar_lea.vmem %s1233_s28, 512 }
  0x80   : > { %666 = vmatprep.subr.bf16.mxu0 %v1576_v7  ;;  %1133 = vmatpush1.bf16.msra.mxu1 %v1669_v29  ;;  %v1606_v33 = vld [vmem:[%s2147_s25 + $0xd4] ss:$8 sps:$4 sm:$0xff]   ;;  %v1608_v35 = vld [vmem:[%s2147_s25 + $0xd0] ss:$8 sps:$4 sm:$0xff]   ;;  %v1609_v37 = vld [vmem:[%s2147_s25 + $0xe4] ss:$8 sps:$4 sm:$0xff]   ;;  %p1852_p1 = scmp.ne.s32.totalorder %s1233_s28, %s1851_s4  ;;  %p1858_p7 = scmp.lt.s32.totalorder %s1233_s28, %s1233_s28 }
  0x81   : > { %1134 = vmatprep.subr.bf16.mxu1 %v1670_v30  ;;  %v1673_v34 = vld [vmem:[%s2153_s23 + $0x44] ss:$16 sps:$4 sm:$0xff]   ;;  %v1675_v36 = vld [vmem:[%s2153_s23 + $0x40] ss:$16 sps:$4 sm:$0xff]   ;;  %p1859_p9 = scmp.lt.s32.totalorder %s1851_s4, %s1851_s4 }
  0x82   : > { %v1676_v38 = vld [vmem:[%s2153_s23 + $0x64] ss:$16 sps:$4 sm:$0xff]   ;;  %v1611_v39 = vld [vmem:[%s2147_s25 + $0xe0] ss:$8 sps:$4 sm:$0xff]   ;;  %v1614_v43 = vld [vmem:[%s2147_s25 + $0xf0] ss:$8 sps:$4 sm:$0xff]   ;;  %p1853_p6 = pnand %p1852_p1, %p1510_p11 }
  0x83   : > { %667 = vmatpush1.bf16.msra.mxu0 %v1578_v8  ;;  %v1678_v40 = vld [vmem:[%s2153_s23 + $0x60] ss:$16 sps:$4 sm:$0xff]   ;;  %v1612_v41 = vld [vmem:[%s2147_s25 + $0xf4] ss:$8 sps:$4 sm:$0xff]   ;;  %v1619_v44 = vld [vmem:[%s2147_s25 + $0x104] ss:$8 sps:$4 sm:$0xff]   ;;  %p1860_p12 = por %p1859_p9, %p1858_p7 }
  0x84   : > { %668 = vmatprep.subr.bf16.mxu0 %v1579_v9  ;;  %1135 = vmatpush1.bf16.msra.mxu1 %v1672_v32  ;;  %v1679_v42 = vld [vmem:[%s2153_s23 + $0x84] ss:$16 sps:$4 sm:$0xff]   ;;  %v1681_v45 = vld [vmem:[%s2153_s23 + $0x80] ss:$16 sps:$4 sm:$0xff]   ;;  %p1854_p4 = pneg %p1853_p6 }
  0x85   : > { %1136 = vmatprep.subr.bf16.mxu1 %v1673_v34  ;;  %v1682_v47 = vld [vmem:[%s2153_s23 + $0xa4] ss:$16 sps:$4 sm:$0xff]   ;;  %v1617_v48 = vld [vmem:[%s2147_s25 + $0x100] ss:$8 sps:$4 sm:$0xff]   ;;  %v1620_v54 = vld [vmem:[%s2147_s25 + $0x110] ss:$8 sps:$4 sm:$0xff]  }
  0x86   : > { %v1622_v50 = vld [vmem:[%s2147_s25 + $0x114] ss:$8 sps:$4 sm:$0xff]   ;;  %v1684_v51 = vld [vmem:[%s2153_s23 + $0xa0] ss:$16 sps:$4 sm:$0xff]   ;;  %v1625_v55 = vld [vmem:[%s2147_s25 + $0x124] ss:$8 sps:$4 sm:$0xff]   ;;  %p1861_p10 = pnand %p1860_p12, %p1854_p4 }
  0x87   : > { %669 = vmatpush1.bf16.msra.mxu0 %v1581_v10  ;;  %v1685_v53 = vld [vmem:[%s2153_s23 + $0xc4] ss:$16 sps:$4 sm:$0xff]   ;;  %v1687_v56 = vld [vmem:[%s2153_s23 + $0xc0] ss:$16 sps:$4 sm:$0xff]  }
  0x88   : > { %670 = vmatprep.subr.bf16.mxu0 %v1582_v11  ;;  %1137 = vmatpush1.bf16.msra.mxu1 %v1675_v36  ;;  %v1688_v57 = vld [vmem:[%s2153_s23 + $0xe4] ss:$16 sps:$4 sm:$0xff]   ;;  %v1623_v58 = vld [vmem:[%s2147_s25 + $0x120] ss:$8 sps:$4 sm:$0xff]   ;;  %v1626_v62 = vld [vmem:[%s2147_s25 + $0x130] ss:$8 sps:$4 sm:$0xff]   ;;  %v1344_v36 = vcombine.low %v2203_v46, %v2203_v46 }
  0x89   : > { %1138 = vmatprep.subr.bf16.mxu1 %v1676_v38  ;;  %v1628_v59 = vld [vmem:[%s2147_s25 + $0x134] ss:$8 sps:$4 sm:$0xff]   ;;  %v1690_v60 = vld [vmem:[%s2153_s23 + $0xe0] ss:$16 sps:$4 sm:$0xff]   ;;  %v1631_v63 = vld [vmem:[%s2147_s25 + $0x144] ss:$8 sps:$4 sm:$0xff]  }
  0x8a   : > { %v1691_v61 = vld [vmem:[%s2153_s23 + $0x104] ss:$16 sps:$4 sm:$0xff]   ;;  %v1693_v0 = vld [vmem:[%s2153_s23 + $0x100] ss:$16 sps:$4 sm:$0xff]  }
  0x8b   : > { %671 = vmatpush1.bf16.msra.mxu0 %v1584_v12  ;;  %v1694_v1 = vld [vmem:[%s2153_s23 + $0x124] ss:$16 sps:$4 sm:$0xff]   ;;  %v1629_v2 = vld [vmem:[%s2147_s25 + $0x140] ss:$8 sps:$4 sm:$0xff]   ;;  %v1632_v6 = vld [vmem:[%s2147_s25 + $0x150] ss:$8 sps:$4 sm:$0xff]  }
  0x8c   : > { %672 = vmatprep.subr.bf16.mxu0 %v1585_v13  ;;  %1139 = vmatpush1.bf16.msra.mxu1 %v1678_v40  ;;  %v1634_v3 = vld [vmem:[%s2147_s25 + $0x154] ss:$8 sps:$4 sm:$0xff]   ;;  %v1696_v4 = vld [vmem:[%s2153_s23 + $0x120] ss:$16 sps:$4 sm:$0xff]   ;;  %v1637_v7 = vld [vmem:[%s2147_s25 + $0x164] ss:$8 sps:$4 sm:$0xff]  }
  0x8d   : > { %1140 = vmatprep.subr.bf16.mxu1 %v1679_v42  ;;  %v1697_v5 = vld [vmem:[%s2153_s23 + $0x144] ss:$16 sps:$4 sm:$0xff]   ;;  %v1699_v8 = vld [vmem:[%s2153_s23 + $0x140] ss:$16 sps:$4 sm:$0xff]  }
  0x8e   : > { %v1700_v9 = vld [vmem:[%s2153_s23 + $0x164] ss:$16 sps:$4 sm:$0xff]   ;;  %v1635_v10 = vld [vmem:[%s2147_s25 + $0x160] ss:$8 sps:$4 sm:$0xff]   ;;  %v1638_v14 = vld [vmem:[%s2147_s25 + $0x170] ss:$8 sps:$4 sm:$0xff]  }
  0x8f   : > { %673 = vmatpush1.bf16.msra.mxu0 %v1587_v16  ;;  %v1640_v11 = vld [vmem:[%s2147_s25 + $0x174] ss:$8 sps:$4 sm:$0xff]   ;;  %v1702_v12 = vld [vmem:[%s2153_s23 + $0x160] ss:$16 sps:$4 sm:$0xff]   ;;  %v1643_v15 = vld [vmem:[%s2147_s25 + $0x184] ss:$8 sps:$4 sm:$0xff]  }
  0x90   : > { %674 = vmatprep.subr.bf16.mxu0 %v1588_v17  ;;  %1141 = vmatpush1.bf16.msra.mxu1 %v1681_v45  ;;  %v1703_v13 = vld [vmem:[%s2153_s23 + $0x184] ss:$16 sps:$4 sm:$0xff]   ;;  %v1705_v16 = vld [vmem:[%s2153_s23 + $0x180] ss:$16 sps:$4 sm:$0xff]  }
  0x91   : > { %1142 = vmatprep.subr.bf16.mxu1 %v1682_v47  ;;  %v1706_v17 = vld [vmem:[%s2153_s23 + $0x1a4] ss:$16 sps:$4 sm:$0xff]   ;;  %v1653_v29 = vld [vmem:[%s2147_s25 + $0x1c0] ss:$8 sps:$4 sm:$0xff]   ;;  %v1720_v47 = vld [vmem:[%s2153_s23 + $0x2c] ss:$16 sps:$4 sm:$0xff]  }
  0x92   : > { %v1655_v28 = vld [vmem:[%s2147_s25 + $0x1c4] ss:$8 sps:$4 sm:$0xff]   ;;  %v1658_v30 = vld [vmem:[%s2147_s25 + $0x1d4] ss:$8 sps:$4 sm:$0xff]   ;;  %v1714_v38 = vld [vmem:[%s2153_s23 + $0x1e0] ss:$16 sps:$4 sm:$0xff]  }
  0x93   : > { %675 = vmatpush1.bf16.msra.mxu0 %v1590_v18  ;;  %v1641_v18 = vld [vmem:[%s2147_s25 + $0x180] ss:$8 sps:$4 sm:$0xff]   ;;  %v1661_v32 = vld [vmem:[%s2147_s25 + $0x1e4] ss:$8 sps:$4 sm:$0xff]   ;;  %v1664_v34 = vld [vmem:[%s2147_s25 + $0x1f4] ss:$8 sps:$4 sm:$0xff]  }
  0x94   : > { %676 = vmatprep.subr.bf16.mxu0 %v1591_v19  ;;  %1143 = vmatpush1.bf16.msra.mxu1 %v1684_v51  ;;  %v1646_v19 = vld [vmem:[%s2147_s25 + $0x194] ss:$8 sps:$4 sm:$0xff]  }
  0x95   : > { %1144 = vmatprep.subr.bf16.mxu1 %v1685_v53  ;;  %v1726_v51 = vld [vmem:[%s2153_s23 + $0x6c] ss:$16 sps:$4 sm:$0xff]  }
  0x96   : > { %v1729_v53 = vld [vmem:[%s2153_s23 + $0x8c] ss:$16 sps:$4 sm:$0xff]  }
  0x97   : > { %677 = vmatpush1.bf16.msra.mxu0 %v1593_v20  ;;  %v1708_v20 = vld [vmem:[%s2153_s23 + $0x1a0] ss:$16 sps:$4 sm:$0xff]  }
  0x98   : > { %678 = vmatprep.subr.bf16.mxu0 %v1594_v21  ;;  %1145 = vmatpush1.bf16.msra.mxu1 %v1687_v56  ;;  %v1709_v21 = vld [vmem:[%s2153_s23 + $0x1c4] ss:$16 sps:$4 sm:$0xff]   ;;  %v1730_v56 = vld [vmem:[%s2153_s23 + $0xa8] ss:$16 sps:$4 sm:$0xff]  }
  0x99   : > { %1146 = vmatprep.subr.bf16.mxu1 %v1688_v57  ;;  %v1735_v57 = vld [vmem:[%s2153_s23 + $0xcc] ss:$16 sps:$4 sm:$0xff]  }
  0x9b   : > { %679 = vmatpush1.bf16.msra.mxu0 %v1596_v22  ;;  %v1644_v22 = vld [vmem:[%s2147_s25 + $0x190] ss:$8 sps:$4 sm:$0xff]  }
  0x9c   : > { %680 = vmatprep.subr.bf16.mxu0 %v1597_v23  ;;  %1147 = vmatpush1.bf16.msra.mxu1 %v1690_v60  ;;  %v1649_v23 = vld [vmem:[%s2147_s25 + $0x1a4] ss:$8 sps:$4 sm:$0xff]   ;;  %v1736_v60 = vld [vmem:[%s2153_s23 + $0xe8] ss:$16 sps:$4 sm:$0xff]  }
  0x9d   : > { %1148 = vmatprep.subr.bf16.mxu1 %v1691_v61  ;;  %v1741_v61 = vld [vmem:[%s2153_s23 + $0x10c] ss:$16 sps:$4 sm:$0xff]  }
  0x9f   : > { %681 = vmatpush1.bf16.msra.mxu0 %v1599_v24  ;;  %v1711_v24 = vld [vmem:[%s2153_s23 + $0x1c0] ss:$16 sps:$4 sm:$0xff]  }
  0xa0   : > { %682 = vmatprep.subr.bf16.mxu0 %v1600_v25  ;;  %1149 = vmatpush1.bf16.msra.mxu1 %v1693_v0  ;;  %v1647_v25 = vld [vmem:[%s2147_s25 + $0x1a0] ss:$8 sps:$4 sm:$0xff]  }
  0xa1   : > { %1150 = vmatprep.subr.bf16.mxu1 %v1694_v1  ;;  %v1742_v0 = vld [vmem:[%s2153_s23 + $0x128] ss:$16 sps:$4 sm:$0xff]   ;;  %v1747_v1 = vld [vmem:[%s2153_s23 + $0x14c] ss:$16 sps:$4 sm:$0xff]  }
  0xa3   : > { %683 = vmatpush1.bf16.msra.mxu0 %v1602_v26  ;;  %v1652_v26 = vld [vmem:[%s2147_s25 + $0x1b4] ss:$8 sps:$4 sm:$0xff]  }
  0xa4   : > { %684 = vmatprep.subr.bf16.mxu0 %v1603_v27  ;;  %1151 = vmatpush1.bf16.msra.mxu1 %v1696_v4  ;;  %v1650_v27 = vld [vmem:[%s2147_s25 + $0x1b0] ss:$8 sps:$4 sm:$0xff]  }
  0xa5   : > { %1152 = vmatprep.subr.bf16.mxu1 %v1697_v5  ;;  %v1748_v4 = vld [vmem:[%s2153_s23 + $0x168] ss:$16 sps:$4 sm:$0xff]   ;;  %v1753_v5 = vld [vmem:[%s2153_s23 + $0x18c] ss:$16 sps:$4 sm:$0xff]  }
  0xa7   : > { %685 = vmatpush1.bf16.msra.mxu0 %v1605_v31  ;;  %v1656_v31 = vld [vmem:[%s2147_s25 + $0x1d0] ss:$8 sps:$4 sm:$0xff]  }
  0xa8   : > { %686 = vmatprep.subr.bf16.mxu0 %v1606_v33  ;;  %1153 = vmatpush1.bf16.msra.mxu1 %v1699_v8  ;;  %v1659_v33 = vld [vmem:[%s2147_s25 + $0x1e0] ss:$8 sps:$4 sm:$0xff]  }
  0xa9   : > { %1154 = vmatprep.subr.bf16.mxu1 %v1700_v9  ;;  %v1754_v8 = vld [vmem:[%s2153_s23 + $0x1a8] ss:$16 sps:$4 sm:$0xff]   ;;  %v1759_v9 = vld [vmem:[%s2153_s23 + $0x1cc] ss:$16 sps:$4 sm:$0xff]  }
  0xab   : > { %687 = vmatpush1.bf16.msra.mxu0 %v1608_v35  ;;  %v1662_v35 = vld [vmem:[%s2147_s25 + $0x1f0] ss:$8 sps:$4 sm:$0xff]  }
  0xac   : > { %688 = vmatprep.subr.bf16.mxu0 %v1609_v37  ;;  %1155 = vmatpush1.bf16.msra.mxu1 %v1702_v12  ;;  %v1712_v37 = vld [vmem:[%s2153_s23 + $0x1e4] ss:$16 sps:$4 sm:$0xff]   ;;  %v1760_v12 = vld [vmem:[%s2153_s23 + $0x1e8] ss:$16 sps:$4 sm:$0xff]  }
  0xad   : > { %1156 = vmatprep.subr.bf16.mxu1 %v1703_v13  ;;  %v742_v13 = vld [vmem:[#allocation8] sm:$0xff] }
  0xaf   : > { %689 = vmatpush1.bf16.msra.mxu0 %v1611_v39  ;;  %v1717_v39 = vld [vmem:[%s2153_s23 + $0xc] ss:$16 sps:$4 sm:$0xff]  }
  0xb0   : > { %690 = vmatprep.subr.bf16.mxu0 %v1612_v41  ;;  %1157 = vmatpush1.bf16.msra.mxu1 %v1705_v16 }
  0xb1   : > { %1158 = vmatprep.subr.bf16.mxu1 %v1706_v17 }
  0xb3   : > { %691 = vmatpush1.bf16.msra.mxu0 %v1614_v43 }
  0xb4   : > { %701 = vmatprep.subr.bf16.mxu0 %v1619_v44  ;;  %1159 = vmatpush1.bf16.msra.mxu1 %v1708_v20  ;;  %v1715_v44 = vld [vmem:[%s2153_s23 + $0x8] ss:$16 sps:$4 sm:$0xff]  }
  0xb5   : > { %1160 = vmatprep.subr.bf16.mxu1 %v1709_v21  ;;  %v744_v21 = vld [vmem:[#allocation8 + $0x10] sm:$0xff] }
  0xb6   : > { %693 = vmatmul.mubr.bf16.vlgmr.msra.gmra.mrb[0].mxu0 %v1342_v49  ;;  %v1723_v49 = vld [vmem:[%s2153_s23 + $0x4c] ss:$16 sps:$4 sm:$0xff]  }
  0xb7   : > { %702 = vmatpush1.bf16.msra.mxu0 %v1617_v48  ;;  %733 = vmatprep.mubr.bf16.mxu0 %v1345_v52  ;;  %v1718_v48 = vld [vmem:[%s2153_s23 + $0x28] ss:$16 sps:$4 sm:$0xff]  }
  0xb8   : > { %703 = vmatprep.subr.bf16.mxu0 %v1622_v50  ;;  %1161 = vmatpush1.bf16.msra.mxu1 %v1711_v24  ;;  %v1721_v50 = vld [vmem:[%s2153_s23 + $0x48] ss:$16 sps:$4 sm:$0xff]  }
  0xb9   : > { %1162 = vmatprep.subr.bf16.mxu1 %v1712_v37  ;;  %v1724_v52 = vld [vmem:[%s2153_s23 + $0x68] ss:$16 sps:$4 sm:$0xff]  }
  0xbb   : > { %704 = vmatpush1.bf16.msra.mxu0 %v1620_v54  ;;  %v1727_v54 = vld [vmem:[%s2153_s23 + $0x88] ss:$16 sps:$4 sm:$0xff]  }
  0xbc   : > { %705 = vmatprep.subr.bf16.mxu0 %v1625_v55  ;;  %1163 = vmatpush1.bf16.msra.mxu1 %v1714_v38  ;;  %v1732_v55 = vld [vmem:[%s2153_s23 + $0xac] ss:$16 sps:$4 sm:$0xff]  }
  0xbd   : > { %1173 = vmatprep.subr.bf16.mxu1 %v1717_v39 }
  0xbf   : > { %706 = vmatpush1.bf16.msra.mxu0 %v1623_v58  ;;  %v1733_v58 = vld [vmem:[%s2153_s23 + $0xc8] ss:$16 sps:$4 sm:$0xff]  }
  0xc0   : > { %707 = vmatprep.subr.bf16.mxu0 %v1628_v59  ;;  %v1738_v59 = vld [vmem:[%s2153_s23 + $0xec] ss:$16 sps:$4 sm:$0xff]  }
  0xc3   : > { %708 = vmatpush1.bf16.msra.mxu0 %v1626_v62  ;;  %v1739_v62 = vld [vmem:[%s2153_s23 + $0x108] ss:$16 sps:$4 sm:$0xff]  }
  0xc4   : > { %709 = vmatprep.subr.bf16.mxu0 %v1631_v63  ;;  %v1744_v63 = vld [vmem:[%s2153_s23 + $0x12c] ss:$16 sps:$4 sm:$0xff]  }
  0xc7   : > { %710 = vmatpush1.bf16.msra.mxu0 %v1629_v2  ;;  %v1745_v2 = vld [vmem:[%s2153_s23 + $0x148] ss:$16 sps:$4 sm:$0xff]  }
  0xc8   : > { %711 = vmatprep.subr.bf16.mxu0 %v1634_v3  ;;  %v1750_v3 = vld [vmem:[%s2153_s23 + $0x16c] ss:$16 sps:$4 sm:$0xff]  }
  0xcb   : > { %712 = vmatpush1.bf16.msra.mxu0 %v1632_v6  ;;  %v1751_v6 = vld [vmem:[%s2153_s23 + $0x188] ss:$16 sps:$4 sm:$0xff]  }
  0xcc   : > { %713 = vmatprep.subr.bf16.mxu0 %v1637_v7  ;;  %v1756_v7 = vld [vmem:[%s2153_s23 + $0x1ac] ss:$16 sps:$4 sm:$0xff]  }
  0xcf   : > { %714 = vmatpush1.bf16.msra.mxu0 %v1635_v10  ;;  %v1757_v10 = vld [vmem:[%s2153_s23 + $0x1c8] ss:$16 sps:$4 sm:$0xff]  }
  0xd0   : > { %715 = vmatprep.subr.bf16.mxu0 %v1640_v11  ;;  %v1762_v11 = vld [vmem:[%s2153_s23 + $0x1ec] ss:$16 sps:$4 sm:$0xff]  }
  0xd3   : > { %716 = vmatpush1.bf16.msra.mxu0 %v1638_v14  ;;  %v743_v14 = vld [vmem:[#allocation8 + $0x8] sm:$0xff] }
  0xd4   : > { %717 = vmatprep.subr.bf16.mxu0 %v1643_v15 }
  0xd7   : > { %718 = vmatpush1.bf16.msra.mxu0 %v1641_v18 }
  0xd8   : > { %719 = vmatprep.subr.bf16.mxu0 %v1646_v19 }
  0xdb   : > { %720 = vmatpush1.bf16.msra.mxu0 %v1644_v22  ;;  %v745_v22 = vld [vmem:[#allocation8 + $0x18] sm:$0xff] }
  0xdc   : > { %721 = vmatprep.subr.bf16.mxu0 %v1649_v23 }
  0xdf   : > { %722 = vmatpush1.bf16.msra.mxu0 %v1647_v25 }
  0xe0   : > { %723 = vmatprep.subr.bf16.mxu0 %v1652_v26 }
  0xe3   : > { %724 = vmatpush1.bf16.msra.mxu0 %v1650_v27 }
  0xe4   : > { %725 = vmatprep.subr.bf16.mxu0 %v1655_v28 }
  0xe7   : > { %726 = vmatpush1.bf16.msra.mxu0 %v1653_v29 }
  0xe8   : > { %727 = vmatprep.subr.bf16.mxu0 %v1658_v30 }
  0xeb   : > { %728 = vmatpush1.bf16.msra.mxu0 %v1656_v31 }
  0xec   : > { %729 = vmatprep.subr.bf16.mxu0 %v1661_v32 }
  0xef   : > { %730 = vmatpush1.bf16.msra.mxu0 %v1659_v33 }
  0xf0   : > { %731 = vmatprep.subr.bf16.mxu0 %v1664_v34 }
  0xf3   : > { %732 = vmatpush1.bf16.msra.mxu0 %v1662_v35 }
  0xf6   : > { %734 = vmatmul.mubr.bf16.vlgmr.msra.gmra.mrb[0].mxu0 %v1344_v36 }
 0x1c9   : > { %v735_v40 = vpop.f32.mrb[0].mxu0 }
 0x1ca   : > { %v737_v41 = vpop.f32.mrb[1].mxu0  ;;  %v2266_v45 = vpack.c.bf16 %v735_v40, %v735_v40 }
 0x1cb   : > { %v747_v42 = vpack.c.bf16 %v737_v41, %v737_v41  ;;  %v739_v43 = vpop.f32.mrb[2].mxu0 }
 0x1cc   : > { %v740_v46 = vpop.f32.mrb[3].mxu0 }
 0x1cd   : > { %1164 = vmatprep.mubr.bf16.mxu1 %v747_v42 }
 0x1ce   : > { %1165 = vmatmul.mubr.bf16.vlgmr.msra.gmra.mrb[0].mxu1 %v2266_v45 }
 0x1cf   : > { %1174 = vmatpush1.bf16.msra.mxu1 %v1715_v44  ;;  %1205 = vmatprep.mubr.bf16.mxu1 %v747_v42 }
 0x1d0   : > { %1175 = vmatprep.subr.bf16.mxu1 %v1720_v47 }
 0x1d3   : > { %1176 = vmatpush1.bf16.msra.mxu1 %v1718_v48 }
 0x1d4   : > { %1177 = vmatprep.subr.bf16.mxu1 %v1723_v49 }
 0x1d7   : > { %1178 = vmatpush1.bf16.msra.mxu1 %v1721_v50 }
 0x1d8   : > { %1179 = vmatprep.subr.bf16.mxu1 %v1726_v51 }
 0x1db   : > { %1180 = vmatpush1.bf16.msra.mxu1 %v1724_v52 }
 0x1dc   : > { %1181 = vmatprep.subr.bf16.mxu1 %v1729_v53 }
 0x1df   : > { %1182 = vmatpush1.bf16.msra.mxu1 %v1727_v54 }
 0x1e0   : > { %1183 = vmatprep.subr.bf16.mxu1 %v1732_v55 }
 0x1e3   : > { %1184 = vmatpush1.bf16.msra.mxu1 %v1730_v56 }
 0x1e4   : > { %1185 = vmatprep.subr.bf16.mxu1 %v1735_v57 }
 0x1e7   : > { %1186 = vmatpush1.bf16.msra.mxu1 %v1733_v58 }
 0x1e8   : > { %1187 = vmatprep.subr.bf16.mxu1 %v1738_v59 }
 0x1eb   : > { %1188 = vmatpush1.bf16.msra.mxu1 %v1736_v60 }
 0x1ec   : > { %1189 = vmatprep.subr.bf16.mxu1 %v1741_v61 }
 0x1ef   : > { %1190 = vmatpush1.bf16.msra.mxu1 %v1739_v62 }
 0x1f0   : > { %1191 = vmatprep.subr.bf16.mxu1 %v1744_v63 }
 0x1f3   : > { %1192 = vmatpush1.bf16.msra.mxu1 %v1742_v0 }
 0x1f4   : > { %1193 = vmatprep.subr.bf16.mxu1 %v1747_v1 }
 0x1f7   : > { %1194 = vmatpush1.bf16.msra.mxu1 %v1745_v2 }
 0x1f8   : > { %1195 = vmatprep.subr.bf16.mxu1 %v1750_v3 }
 0x1fb   : > { %1196 = vmatpush1.bf16.msra.mxu1 %v1748_v4 }
 0x1fc   : > { %1197 = vmatprep.subr.bf16.mxu1 %v1753_v5 }
 0x1ff   : > { %1198 = vmatpush1.bf16.msra.mxu1 %v1751_v6 }
 0x200   : > { %1199 = vmatprep.subr.bf16.mxu1 %v1756_v7 }
 0x203   : > { %1200 = vmatpush1.bf16.msra.mxu1 %v1754_v8 }
 0x204   : > { %1201 = vmatprep.subr.bf16.mxu1 %v1759_v9 }
 0x207   : > { %1202 = vmatpush1.bf16.msra.mxu1 %v1757_v10 }
 0x208   : > { %1203 = vmatprep.subr.bf16.mxu1 %v1762_v11 }
 0x20b   : > { %1204 = vmatpush1.bf16.msra.mxu1 %v1760_v12 }
 0x20e   : > { %1206 = vmatmul.mubr.bf16.vlgmr.msra.gmra.mrb[4].mxu1 %v2266_v45 }
 0x2a1   : > { %v1166_v15 = vpop.f32.mrb[0].mxu1 }
 0x2a2   : > { %v1214_v16 = vadd.f32 %v1166_v15, %v742_v13  ;;  %v1168_v17 = vpop.f32.mrb[1].mxu1 }
 0x2a3   : > { %v1215_v18 = vadd.f32 %v1168_v17, %v743_v14  ;;  %v1170_v19 = vpop.f32.mrb[2].mxu1 }
 0x2a4   : > { %1218 = vst [vmem:[#allocation8] sm:$0xff] %v1214_v16  ;;  %v1171_v20 = vpop.f32.mrb[3].mxu1 }
 0x2a5   : > { %1219 = vst [vmem:[#allocation8 + $0x8] sm:$0xff] %v1215_v18 }
 0x2e1   : > { %v1207_v23 = vpop.f32.mrb[4].mxu1 }
 0x2e2   : > { %v1216_v24 = vadd.f32 %v1207_v23, %v744_v21  ;;  %v1209_v25 = vpop.f32.mrb[5].mxu1 }
 0x2e3   : > { %v1217_v26 = vadd.f32 %v1209_v25, %v745_v22  ;;  %v1211_v27 = vpop.f32.mrb[6].mxu1 }
 0x2e4   : > { %1220 = vst [vmem:[#allocation8 + $0x10] sm:$0xff] %v1216_v24  ;;  %v1212_v28 = vpop.f32.mrb[7].mxu1 }
 0x2e5   : > { %1221 = vst [vmem:[#allocation8 + $0x18] sm:$0xff] %v1217_v26 }
 0x2e6   : > { %1864 = shalt.err (!%p1861_p10)
}
 0x2e7   : > { %s1865_s20 = scalar_lea.hbm %s2344_s3, 512 }
 0x2e8   : > { %p1866_p0 = scmp.ne.s32.totalorder %s2344_s3, %s1865_s20  ;;  %p1871_p13 = scmp.lt.u32.totalorder %s1865_s20, %s2344_s3 }
 0x2ea   : > { %p1867_p8 = pnand %p1866_p0, %p1510_p11 }
 0x2ec   : > { %p1868_p2 = pneg %p1867_p8 }
 0x2ee   : > { %p1873_p3 = pnand %p1871_p13, %p1868_p2 }
 0x2f0   : > { %1876 = shalt.err (!%p1873_p3)
}
 0x2f1   : > { %1493 = dma.vmem_to_hbm [thread:$0]  (%p1510_p11), %s1233_s28, 512, %s2344_s3, [#allocation4]  }
 0x2f2   : > { %1910 = dma.done.wait (%p1510_p11), [#allocation4], 512  }
 0x2f3   : > { %1912 = vsyncadd (%p1510_p11), [#allocation4], 4294966784 }
 0x2f4 PF: > { %s18_s17 = sadd.s32 1, %s1935_s17   ;;  %s2356_s12 = smov %s1919_s13 }
 0x2f5   : > { %p15_p5 = scmp.ge.s32.totalorder %s18_s17, 4   ;;  %s2357_s13 = smov %s1923_s14 }
 0x2f6   : > { %s2358_s14 = smov %s2010_s24  ;;  %s2359_s15 = smov %s1931_s16 }
 0x2f7   : > { %s2360_s16 = smov %s2362_s18  ;;  %17 = sbr.rel (!%p15_p5) target bundleno = 6 (0x6), region = 91 }
 0x2fe   :  { %1245 = vsyncpa [#allocation3], 1 }
 0x2ff   :  { %1247 = vsyncpa [#allocation3 + $0x1], 1 }
 0x300   :  { %1248 = vsyncpa [#allocation6], 1 }
 0x301   :  { %1250 = vsyncpa [#allocation6 + $0x1], 1 }
 0x302   :  { %1251 = vsyncpa [#allocation4], 1 }
 0x303   :  { %1253 = vsyncpa [#allocation4 + $0x1], 1 }

</bundles_post_ra>
